<compile_context>
chip_gen: v5e
topology: v5e:2x2
jax: 0.10.0
libtpu: 0.0.40
codegen_flags: <defaults>
</compile_context>

<pallas_src>
import functools

import jax
import jax.numpy as jnp
from jax.experimental import pallas as pl
from jax.experimental.pallas import tpu as pltpu

LANE = 128          # TPU lane width
NEG_BIG = -1e30     # bias for padded classes -> exp underflows to exactly 0


def _round_up(n, m):
    return (n + m - 1) // m * m


def _pick_block_b(B):
    """Batch tile: minimal pad for small B, big tiles (and >=2 grid steps) for large B."""
    if B <= 128:
        return _round_up(max(B, 1), 8)          # single step, tiny/no row pad
    half = _round_up((B + 1) // 2, 8)           # >= 2 steps -> both v7x TCs busy
    return min(512, half)                       # cap: amortize per-step overhead


def classifier_kernel(x_ref, w1_ref, b1_ref, w2_ref, b2_ref, o_ref):
    # Hidden layer: Linear(input_dim, 128) + ReLU.
    # Cast x to bf16 in-kernel; MXU accumulates in f32 (Mosaic pads K=input_dim).
    x = x_ref[...].astype(jnp.bfloat16)
    h = jnp.dot(x, w1_ref[...], preferred_element_type=jnp.float32)
    h = jnp.maximum(h + b1_ref[...], 0.0)                 # f32 bias add + ReLU (VPU)

    # Output layer: Linear(128, C_padded).  Cast activations to bf16 for MXU.
    logits = jnp.dot(h.astype(w2_ref.dtype), w2_ref[...],
                     preferred_element_type=jnp.float32)
    logits = logits + b2_ref[...]                         # padded lanes get -1e30

    # Numerically stable softmax over the (lane-dense, padded) class axis.
    m = jnp.max(logits, axis=1, keepdims=True)
    e = jnp.exp(logits - m)                               # padded lanes -> exactly 0
    denom = jnp.sum(e, axis=1, keepdims=True)
    o_ref[...] = (e / denom).astype(o_ref.dtype)          # exact divide: rows sum to 1


def prepare_params(w1, b1, w2, b2):
    """One-time pad/cast of parameters (hoisted out of the per-call path).

    Weights are stored as (in_features, out_features) so the kernel computes
    x @ W directly (same math as PyTorch's x @ W.T with its (out, in) storage).
    Padded w2 columns are zero and padded b2 entries are -1e30, so padded
    classes contribute exactly 0 to the softmax.
    """
    D, H = w1.shape
    C = w2.shape[1]
    assert C >= 1, "need at least one real class"
    Cp = _round_up(C, LANE)
    w1_p = w1.astype(jnp.bfloat16)                                   # (D, H)
    b1_p = b1.reshape(1, H).astype(jnp.float32)                      # (1, H)
    w2_p = jnp.zeros((H, Cp), jnp.bfloat16).at[:, :C].set(w2.astype(jnp.bfloat16))
    b2_p = jnp.full((1, Cp), NEG_BIG, jnp.float32).at[:, :C].set(
        b2.reshape(1, C).astype(jnp.float32))
    return w1_p, b1_p, w2_p, b2_p


@functools.partial(jax.jit, static_argnames=("num_classes",))
def classifier_forward(x, w1_p, b1_p, w2_p, b2_p, *, num_classes):
    """x: (B, input_dim) f32 -> (B, num_classes) f32 class probabilities."""
    B, D = x.shape
    H = w1_p.shape[1]
    Cp = w2_p.shape[1]

    block_b = _pick_block_b(B)
    Bp = _round_up(B, block_b)
    # Only a (small) row pad if needed; no K pad, no dtype repack of x.
    x_p = x if Bp == B else jnp.zeros((Bp, D), x.dtype).at[:B, :].set(x)

    out = pl.pallas_call(
        classifier_kernel,
        out_shape=jax.ShapeDtypeStruct((Bp, Cp), jnp.float32),
        grid=(Bp // block_b,),
        in_specs=[
            pl.BlockSpec((block_b, D), lambda i: (i, 0)),   # x: tiled over batch
            pl.BlockSpec((D, H), lambda i: (0, 0)),         # w1: resident
            pl.BlockSpec((1, H), lambda i: (0, 0)),         # b1: resident
            pl.BlockSpec((H, Cp), lambda i: (0, 0)),        # w2: resident
            pl.BlockSpec((1, Cp), lambda i: (0, 0)),        # b2: resident
        ],
        out_specs=pl.BlockSpec((block_b, Cp), lambda i: (i, 0)),
        compiler_params=pltpu.CompilerParams(
            dimension_semantics=("parallel",),              # split across TCs on v7x
        ),
    )(x_p, w1_p, b1_p, w2_p, b2_p)

    return out[:B, :num_classes]


def init_params(key, input_dim, hidden_dim, num_classes):
    """Deterministic init mirroring nn.Linear's U(-1/sqrt(fan_in), +1/sqrt(fan_in))."""
    k1, k2, k3, k4 = jax.random.split(key, 4)
    bound1 = 1.0 / jnp.sqrt(jnp.float32(input_dim))
    bound2 = 1.0 / jnp.sqrt(jnp.float32(hidden_dim))
    w1 = jax.random.uniform(k1, (input_dim, hidden_dim), jnp.float32, -bound1, bound1)
    b1 = jax.random.uniform(k2, (hidden_dim,), jnp.float32, -bound1, bound1)
    w2 = jax.random.uniform(k3, (hidden_dim, num_classes), jnp.float32, -bound2, bound2)
    b2 = jax.random.uniform(k4, (num_classes,), jnp.float32, -bound2, bound2)
    return w1, b1, w2, b2


def _reference_f32(x, w1, b1, w2, b2):
    return jax.nn.softmax(jnp.maximum(x @ w1 + b1, 0.0) @ w2 + b2, axis=1)


if __name__ == "__main__":
    key = jax.random.PRNGKey(0)
    k_x, k_x2, k_p = jax.random.split(key, 3)

    batch = 8
    input_dim = 41          # stand-in for the NSL-KDD feature count
    hidden_dim = 128
    num_classes = 5         # {normal, DoS, Probe, R2L, U2R}

    w1, b1, w2, b2 = init_params(k_p, input_dim, hidden_dim, num_classes)
    params = prepare_params(w1, b1, w2, b2)      # one-time pad/cast

    # --- small-batch (serving) case ---
    x = jax.random.normal(k_x, (batch, input_dim), dtype=jnp.float32)
    out = classifier_forward(x, *params, num_classes=num_classes)
    out = jax.block_until_ready(out)
    assert out.shape == (batch, num_classes)

    # Reference 1: same bf16-MXU / f32-accumulate precision as the kernel.
    x16, w1_16, w2_16 = (a.astype(jnp.bfloat16) for a in (x, w1, w2))
    h_ref = jnp.maximum(
        jnp.dot(x16, w1_16, preferred_element_type=jnp.float32) + b1, 0.0)
    logits_ref = jnp.dot(h_ref.astype(jnp.bfloat16), w2_16,
                         preferred_element_type=jnp.float32) + b2
    ref_matched = jax.nn.softmax(logits_ref, axis=1)
    assert jnp.allclose(out, ref_matched, atol=1e-3), \
        float(jnp.max(jnp.abs(out - ref_matched)))

    # Reference 2: full-f32 reference of the original module (looser tolerance
    # because the kernel feeds the MXU bf16 operands).
    ref_f32 = _reference_f32(x, w1, b1, w2, b2)
    assert jnp.allclose(out, ref_f32, atol=2e-2), \
        float(jnp.max(jnp.abs(out - ref_f32)))

    # Rows must sum to 1 (exact-divide normalization).
    assert jnp.allclose(jnp.sum(out, axis=1), 1.0, atol=1e-4)

    # --- larger batch: exercises row padding + multi-step grid (>=2 TC steps) ---
    x_big = jax.random.normal(k_x2, (300, input_dim), dtype=jnp.float32)
    out_big = jax.block_until_ready(
        classifier_forward(x_big, *params, num_classes=num_classes))
    assert out_big.shape == (300, num_classes)
    ref_big = _reference_f32(x_big, w1, b1, w2, b2)
    assert jnp.allclose(out_big, ref_big, atol=2e-2)
    assert jnp.allclose(jnp.sum(out_big, axis=1), 1.0, atol=1e-4)

    print("KERNEL_OK")
</pallas_src>

<mosaic_0001>
module attributes {stable_mosaic.version = 11 : i64} {
  func.func @classifier_kernel(%arg0: i32, %arg1: memref<8x41xf32, #tpu.memory_space<vmem>>, %arg2: memref<41x128xbf16, #tpu.memory_space<vmem>>, %arg3: memref<1x128xf32, #tpu.memory_space<vmem>>, %arg4: memref<128x128xbf16, #tpu.memory_space<vmem>>, %arg5: memref<1x128xf32, #tpu.memory_space<vmem>>, %arg6: memref<8x128xf32, #tpu.memory_space<vmem>>) attributes {dimension_semantics = [#tpu.dimension_semantics<parallel>], iteration_bounds = array<i64: 1>, scalar_prefetch = 0 : i64, scratch_operands = 0 : i64, tpu.core_type = #tpu.core_type<tc>, window_params = [{transform_indices = @transform_0, window_bounds = array<i64: 8, 41>}, {pipeline_mode = #tpu.pipeline_mode<synchronous>, transform_indices = @transform_1, window_bounds = array<i64: 41, 128>}, {pipeline_mode = #tpu.pipeline_mode<synchronous>, transform_indices = @transform_2, window_bounds = array<i64: 1, 128>}, {pipeline_mode = #tpu.pipeline_mode<synchronous>, transform_indices = @transform_3, window_bounds = array<i64: 128, 128>}, {pipeline_mode = #tpu.pipeline_mode<synchronous>, transform_indices = @transform_4, window_bounds = array<i64: 1, 128>}, {transform_indices = @transform_5, window_bounds = array<i64: 8, 128>}]} {
    %c0 = arith.constant 0 : index
    %c0_0 = arith.constant 0 : index
    %0 = vector.load %arg1[%c0, %c0_0] : memref<8x41xf32, #tpu.memory_space<vmem>>, vector<8x41xf32>
    %1 = arith.truncf %0 : vector<8x41xf32> to vector<8x41xbf16>
    %c0_1 = arith.constant 0 : index
    %c0_2 = arith.constant 0 : index
    %2 = vector.load %arg2[%c0_1, %c0_2] : memref<41x128xbf16, #tpu.memory_space<vmem>>, vector<41x128xbf16>
    %cst = arith.constant dense<0.000000e+00> : vector<8x128xf32>
    %3 = tpu.matmul %1, %2, %cst {dimension_numbers = #tpu.dot_dimension_numbers<[1], [0], [0], [1], [0, 0, 1, 1], [], []>} : vector<8x41xbf16>, vector<41x128xbf16>, vector<8x128xf32> -> vector<8x128xf32>
    %c0_3 = arith.constant 0 : index
    %c0_4 = arith.constant 0 : index
    %4 = vector.load %arg3[%c0_3, %c0_4] : memref<1x128xf32, #tpu.memory_space<vmem>>, vector<1x128xf32>
    %5 = vector.broadcast %4 : vector<1x128xf32> to vector<8x128xf32>
    %6 = arith.addf %3, %5 : vector<8x128xf32>
    %cst_5 = arith.constant 0.000000e+00 : f32
    %7 = vector.broadcast %cst_5 : f32 to vector<8x128xf32>
    %8 = arith.maximumf %6, %7 : vector<8x128xf32>
    %9 = arith.truncf %8 : vector<8x128xf32> to vector<8x128xbf16>
    %c0_6 = arith.constant 0 : index
    %c0_7 = arith.constant 0 : index
    %10 = vector.load %arg4[%c0_6, %c0_7] : memref<128x128xbf16, #tpu.memory_space<vmem>>, vector<128x128xbf16>
    %cst_8 = arith.constant dense<0.000000e+00> : vector<8x128xf32>
    %11 = tpu.matmul %9, %10, %cst_8 {dimension_numbers = #tpu.dot_dimension_numbers<[1], [0], [0], [1], [0, 0, 1, 1], [], []>} : vector<8x128xbf16>, vector<128x128xbf16>, vector<8x128xf32> -> vector<8x128xf32>
    %c0_9 = arith.constant 0 : index
    %c0_10 = arith.constant 0 : index
    %12 = vector.load %arg5[%c0_9, %c0_10] : memref<1x128xf32, #tpu.memory_space<vmem>>, vector<1x128xf32>
    %13 = vector.broadcast %12 : vector<1x128xf32> to vector<8x128xf32>
    %14 = arith.addf %11, %13 : vector<8x128xf32>
    %cst_11 = arith.constant dense<0xFF800000> : vector<8xf32>
    %15 = vector.multi_reduction <maximumf>, %14, %cst_11 [1] : vector<8x128xf32> to vector<8xf32>
    %16 = vector.shape_cast %15 : vector<8xf32> to vector<8x1xf32>
    %17 = vector.broadcast %16 : vector<8x1xf32> to vector<8x128xf32>
    %18 = arith.subf %14, %17 : vector<8x128xf32>
    %19 = math.exp %18 : vector<8x128xf32>
    %cst_12 = arith.constant dense<0.000000e+00> : vector<8xf32>
    %20 = vector.multi_reduction <add>, %19, %cst_12 [1] : vector<8x128xf32> to vector<8xf32>
    %21 = vector.shape_cast %20 : vector<8xf32> to vector<8x1xf32>
    %22 = vector.broadcast %21 : vector<8x1xf32> to vector<8x128xf32>
    %23 = arith.divf %19, %22 : vector<8x128xf32>
    %c0_13 = arith.constant 0 : index
    %c0_14 = arith.constant 0 : index
    %24 = vector.load %arg6[%c0_13, %c0_14] : memref<8x128xf32, #tpu.memory_space<vmem>>, vector<8x128xf32>
    tpu.vector_store %arg6[%c0_13, %c0_14], %23 {strides = array<i32>} : memref<8x128xf32, #tpu.memory_space<vmem>>, vector<8x128xf32>,
    return
  }
  func.func @transform_0(%arg0: i32) -> (i32, i32) {
    %c0_i32 = arith.constant 0 : i32
    %c0_i32_0 = arith.constant 0 : i32
    return %arg0, %c0_i32 : i32, i32
  }
  func.func @transform_1(%arg0: i32) -> (i32, i32) {
    %c0_i32 = arith.constant 0 : i32
    %c0_i32_0 = arith.constant 0 : i32
    %c0_i32_1 = arith.constant 0 : i32
    return %c0_i32, %c0_i32_0 : i32, i32
  }
  func.func @transform_2(%arg0: i32) -> (i32, i32) {
    %c0_i32 = arith.constant 0 : i32
    %c0_i32_0 = arith.constant 0 : i32
    %c0_i32_1 = arith.constant 0 : i32
    return %c0_i32, %c0_i32_0 : i32, i32
  }
  func.func @transform_3(%arg0: i32) -> (i32, i32) {
    %c0_i32 = arith.constant 0 : i32
    %c0_i32_0 = arith.constant 0 : i32
    %c0_i32_1 = arith.constant 0 : i32
    return %c0_i32, %c0_i32_0 : i32, i32
  }
  func.func @transform_4(%arg0: i32) -> (i32, i32) {
    %c0_i32 = arith.constant 0 : i32
    %c0_i32_0 = arith.constant 0 : i32
    %c0_i32_1 = arith.constant 0 : i32
    return %c0_i32, %c0_i32_0 : i32, i32
  }
  func.func @transform_5(%arg0: i32) -> (i32, i32) {
    %c0_i32 = arith.constant 0 : i32
    %c0_i32_0 = arith.constant 0 : i32
    return %arg0, %c0_i32 : i32, i32
  }
}

</mosaic_0001>

<bundles_post_ra>
// kernel: classifier_forward.1
= control target key start
LH: loop header
LB: loop body
LE: loop exit
PB: predicated region body
PF: predicated region fallthrough
CT: control target
= control target key end

     0   :  { %10 = vsyncpa [#allocation3], 0  ;;  %s470_s0 = inlined_call_operand.hbm [shape: f32[8,41], index: 0, kind: input, shape index: {}]   ;;  %s471_s1 = inlined_call_operand.hbm [shape: bf16[41,128], index: 1, kind: input, shape index: {}]   ;;  %s472_s2 = inlined_call_operand.vmem [shape: f32[1,128], index: 2, kind: input, shape index: {}]   ;;  %s473_s3 = inlined_call_operand.hbm [shape: bf16[128,128], index: 3, kind: input, shape index: {}]   ;;  %s474_s4 = inlined_call_operand.vmem [shape: f32[1,128], index: 4, kind: input, shape index: {}]   ;;  %s475_s5 = inlined_call_operand.hbm [shape: f32[8,128], index: 5, kind: output, shape index: {}]  }
   0x1   :  { %11 = vsyncpa [#allocation6], 0  ;;  %s28_s20 = sshll.u32 %s471_s1, 4  ;;  %s29_s20 = int_to_ptr.hbm [resolvable:$true] %s28_s20 }
   0x2   :  { %12 = vsyncpa [#allocation4], 0  ;;  %s415_s21 = smov [#allocation5]   ;;  %s18_s25 = sshll.u32 %s470_s0, 4  ;;  %s19_s25 = int_to_ptr.hbm [resolvable:$true] %s18_s25 }
   0x3   :  { %s30_s22 = sshll.u32 %s415_s21, 4  ;;  %s416_s26 = smov 64   ;;  %s31_s22 = int_to_ptr.vmem [resolvable:$true] %s30_s22 }
   0x4   :  { %s417_s27 = smov 4   ;;  %s418_s28 = smov [#allocation2]  }
   0x5   :  { %36 = dma.hbm_to_vmem [thread:$0]  %s29_s20, 384, %s31_s22, [#allocation6], %s416_s26, %s416_s26, %s417_s27  }
   0x6   :  { %s20_s29 = sshll.u32 %s418_s28, 4  ;;  %s43_s7 = sshll.u32 %s473_s3, 4  ;;  %s21_s29 = int_to_ptr.vmem [resolvable:$true] %s20_s29  ;;  %s44_s7 = int_to_ptr.hbm [resolvable:$true] %s43_s7 }
   0x7   :  { %23 = dma.hbm_to_vmem [thread:$0]  %s19_s25, 128, %s21_s29, [#allocation3]  }
   0x8   :  { %s419_s1 = smov [#allocation7]  }
   0x9   :  { %s45_s8 = sshll.u32 %s419_s1, 4  ;;  %s46_s8 = int_to_ptr.vmem [resolvable:$true] %s45_s8 }
   0xa   :  { %51 = dma.hbm_to_vmem [thread:$0]  %s44_s7, 1024, %s46_s8, [#allocation6], %s416_s26, %s416_s26, %s417_s27  }
   0xb   :  { %409 = dma.done.wait [#allocation3], 128  }
   0xc   :  { %410 = vsyncadd [#allocation3], 4294967168 }
   0xd   :  { %411 = dma.done.wait [#allocation6], 1408  }
   0xe   :  { %412 = vsyncadd [#allocation6], 4294965888  ;;  %vm100_vm0 = vcmask 1043456   ;;  %vm101_vm1 = vcmask 1044480   ;;  %v420_v0 = vmov 65535   ;;  %v299_v6 = vld [vmem:[#allocation7 + $0x38] sm:$0xff] }
   0xf   :  { %v102_v1 = vsel %vm100_vm0, 4294967295, %v420_v0  ;;  %v254_v2 = vld [vmem:[#allocation5 + $0x10] sm:$0xf]  ;;  %v291_v3 = vld [vmem:[#allocation5 + $0x10] sm:$0x10]  ;;  %190 = vmatpush.bf16.msra.mxu1 %v299_v6  ;;  %v298_v8 = vld [vmem:[#allocation7 + $0x30] sm:$0xff] }
  0x10   :  { %v103_v4 = vsel %vm101_vm1, %v102_v1, 0  ;;  %v255_v5 = vor.u32 %v291_v3, %v254_v2  ;;  %v290_v9 = vld [vmem:[#allocation5 + $0x8] sm:$0xff]  ;;  %v297_v10 = vld [vmem:[#allocation7 + $0x28] sm:$0xff]  ;;  %v67_v12 = vld [vmem:[#allocation2] sm:$0xff]  ;;  %vm96_vm2 = vcmask 334848   ;;  %s233_s13 = sshll.u32 %s475_s5, 4  ;;  %s234_s13 = int_to_ptr.hbm [resolvable:$true] %s233_s13 }
  0x11   :  { %v289_v11 = vld [vmem:[#allocation5] sm:$0xff]  ;;  %v296_v13 = vld [vmem:[#allocation7 + $0x20] sm:$0xff]  ;;  %v68_v14 = vpack.c.bf16 %v67_v12, %v67_v12  ;;  %v295_v15 = vld [vmem:[#allocation7 + $0x18] sm:$0xff] }
  0x12   :  { %v105_v7 = vand.u32 %v255_v5, %v103_v4  ;;  %v294_v16 = vld [vmem:[#allocation7 + $0x10] sm:$0xff]  ;;  %v293_v17 = vld [vmem:[#allocation7 + $0x8] sm:$0xff]  ;;  %v292_v18 = vld [vmem:[#allocation7] sm:$0xff] }
  0x13   :  { %191 = vmatpush.bf16.msra.mxu1 %v298_v8  ;;  %v307_v19 = vld [vmem:[%s472_s2] ss:$0 sm:$0xff]  ;;  %s421_s2 = smov [#allocation8]  }
  0x14   :  { %112 = vmatpush.bf16.msra.mxu0 %v105_v7  ;;  %v308_v25 = vld [vmem:[%s474_s4] ss:$0 sm:$0xff]  ;;  %s231_s4 = sshll.u32 %s421_s2, 4  ;;  %s232_s4 = int_to_ptr.vmem [resolvable:$true] %s231_s4 }
  0x17   :  { %192 = vmatpush.bf16.msra.mxu1 %v297_v10 }
  0x18   :  { %113 = vmatpush.bf16.msra.mxu0 %v290_v9 }
  0x1b   :  { %193 = vmatpush.bf16.msra.mxu1 %v296_v13 }
  0x1c   :  { %114 = vmatpush.bf16.msra.mxu0 %v289_v11 }
  0x1f   :  { %256 = vmatmul.msk.bf16.vlgmr.msra.gmra.mxu0 %vm96_vm2, %v68_v14  ;;  %194 = vmatpush.bf16.msra.mxu1 %v295_v15 }
  0x23   :  { %195 = vmatpush.bf16.msra.mxu1 %v294_v16 }
  0x27   :  { %196 = vmatpush.bf16.msra.mxu1 %v293_v17 }
  0x2b   :  { %197 = vmatpush.bf16.msra.mxu1 %v292_v18 }
  0x9c   :  { %v116_v20 = vpop.f32.mrf.mxu0 }
  0x9d   :  { %v117_v21 = vadd.f32 %v307_v19, %v116_v20 }
  0x9f   :  { %v120_v22 = vmax.f32 %v117_v21, 0.0 }
  0xa1   :  { %v121_v23 = vpack.c.bf16 %v120_v22, %v120_v22 }
  0xa3   :  { %198 = vmatmul.bf16.vlgmr.msra.gmra.mxu1 %v121_v23 }
  0xa4   :  { %v118_v24 = vpop.f32.mrf.mxu0 }
 0x120   :  { %v199_v26 = vpop.f32.mrf.mxu1 }
 0x121   :  { %v200_v27 = vadd.f32 %v308_v25, %v199_v26 }
 0x123   :  { %203 = vmax.xlane.f32.xlu0 %v200_v27 }
 0x128   :  { %v201_v28 = vpop.f32.mrf.mxu1 }
 0x196   :  { %v204_v29 = vpop.xlane.xlu0 %203 }
 0x197   :  { %v205_v30 = vsub.f32 %v200_v27, %v204_v29 }
 0x199   :  { %v206_v31 = vmul.f32 1.442695, %v205_v30 }
 0x19b   :  { %309 = vpow2.f32 %v206_v31 }
 0x1a1   :  { %v310_v32 = vpop.eup %309 }
 0x1a2   :  { %208 = vadd.xlane.f32.xlu0 %v310_v32 }
 0x215   :  { %v209_v33 = vpop.xlane.xlu0 %208 }
 0x216   :  { %311 = vrcp.f32 %v209_v33  ;;  %v221_v37 = vand.u32 2147483648, %v209_v33  ;;  %v219_v39 = vand.u32 2147483647, %v209_v33  ;;  %vm215_vm4 = vweird.f32 %v209_v33 }
 0x218   :  { %v222_v41 = vor.u32 1.1754944e-38, %v221_v37  ;;  %vm220_vm6 = vcmp.eq.f32.partialorder %v219_v39, 8.507059e+37 }
 0x21c   :  { %v312_v34 = vpop.eup %311 }
 0x21d   :  { %v211_v35 = vmul.f32 %v312_v34, %v209_v33  ;;  %vm216_vm3 = vweird.f32 %v312_v34 }
 0x21e   :  { %vm217_vm5 = vmor %vm215_vm4, %vm216_vm3 }
 0x21f   :  { %v212_v36 = vsub.f32 1.0, %v211_v35 }
 0x221   :  { %v213_v38 = vmul.f32 %v312_v34, %v212_v36 }
 0x223   :  { %v214_v40 = vadd.f32 %v312_v34, %v213_v38 }
 0x225   :  { %v218_v42 = vsel %vm217_vm5, %v312_v34, %v214_v40 }
 0x226   :  { %v223_v43 = vsel %vm220_vm6, %v222_v41, %v218_v42 }
 0x227   :  { %v224_v44 = vmul.f32 %v310_v32, %v223_v43 }
 0x229   :  { %225 = vst [vmem:[#allocation8] sm:$0xff] %v224_v44 }
 0x22a   :  { %236 = dma.vmem_to_hbm [thread:$0]  %s232_s4, 128, %s234_s13, [#allocation4]  }
 0x22b   :  { %413 = dma.done.wait [#allocation4], 128  }
 0x22c   :  { %414 = vsyncadd [#allocation4], 4294967168 }
 0x22d   :  { %241 = vsyncpa [#allocation3], 1 }
 0x22e   :  { %242 = vsyncpa [#allocation6], 1 }
 0x22f   :  { %243 = vsyncpa [#allocation4], 1 }

</bundles_post_ra>
